<compile_context>
chip_gen: v7x
topology: tpu7x:2x2x1
jax: 0.10.0
libtpu: 0.0.40
codegen_flags: <defaults>
</compile_context>

<pallas_src>
import enum
import functools

import jax
import jax.numpy as jnp
import numpy as np
from jax.experimental import pallas as pl
from jax.experimental.pallas import tpu as pltpu


# ----------------------------------------------------------------------------
# Tiling helpers / knobs
# ----------------------------------------------------------------------------
_VMEM_LIMIT_BYTES = 32 * 1024 * 1024   # explicit scoped-VMEM request (>= v5e default)
# TODO(synk): derive per-generation budgets (v7x: 64 MiB physical VMEM) via
#             pltpu.get_tpu_info() once running on hardware.
_CONV_TILE_BUDGET = 3 * 1024 * 1024    # approx per-step working-set target (bytes)
_POOL_TILE_BUDGET = 2 * 1024 * 1024
_RELU_TILE_BUDGET = 2 * 1024 * 1024


def _largest_divisor_tile(total, per_unit_bytes, budget_bytes):
    """Largest divisor t of `total` with t * per_unit_bytes <= budget (>= 1)."""
    best = 1
    for t in range(1, total + 1):
        if total % t == 0 and t * per_unit_bytes <= budget_bytes:
            best = t
    return best


# ----------------------------------------------------------------------------
# 3x3 convolution (stride 1, padding 1), optionally fused ReLU
# ----------------------------------------------------------------------------
def _conv3x3_kernel(x_mid_ref, x_top_ref, x_bot_ref, w_ref, b_ref, o_ref,
                    *, groups, apply_relu):
    # x_mid_ref: (1, tH, W, Cin)   current row tile
    # x_top_ref: (1, 1, W, Cin)    row just above the tile (clamped at image top)
    # x_bot_ref: (1, 1, W, Cin)    row just below the tile (clamped at image bottom)
    # w_ref:     (G, K, Cout)      K-packed weights (one matrix per tap group)
    # b_ref:     (1, Cout)
    # o_ref:     (1, tH, W, Cout)
    h = pl.program_id(1)
    n_tiles = pl.num_programs(1)
    tH, W, cin = x_mid_ref.shape[1], x_mid_ref.shape[2], x_mid_ref.shape[3]
    cout = o_ref.shape[3]

    mid = x_mid_ref[0]                                        # (tH, W, Cin)
    top = x_top_ref[0, 0]                                     # (W, Cin)
    bot = x_bot_ref[0, 0]                                     # (W, Cin)
    # Zero the halo rows at the image borders (index_map clamped them in-range).
    top = jnp.where(h > 0, top, jnp.zeros_like(top))
    bot = jnp.where(h < n_tiles - 1, bot, jnp.zeros_like(bot))

    band = jnp.concatenate([top[None], mid, bot[None]], axis=0)   # (tH+2, W, Cin)
    zcol = jnp.zeros((tH + 2, 1, cin), band.dtype)
    bandp = jnp.concatenate([zcol, band, zcol], axis=1)           # (tH+2, W+2, Cin)

    # Accumulator initialised with the broadcast bias (saves one VPU pass).
    acc = jnp.broadcast_to(b_ref[...], (tH * W, cout)).astype(jnp.float32)

    # One (tH*W, K) @ (K, Cout) MXU dot per tap group (K = 3*Cin, or 9*Cin for
    # the Cin=3 first layer) instead of 9 shallow K=Cin dots.
    for g, group in enumerate(groups):
        patches = [bandp[dy:dy + tH, dx:dx + W, :] for (dy, dx) in group]
        pk = jnp.concatenate(patches, axis=-1)                    # (tH, W, K)
        pk = pk.reshape(tH * W, len(group) * cin)
        acc = acc + jnp.dot(pk, w_ref[g], preferred_element_type=jnp.float32)

    if apply_relu:
        acc = jnp.maximum(acc, 0.0)
    o_ref[0] = acc.reshape(tH, W, cout).astype(o_ref.dtype)


def conv3x3(x_nhwc, w, b, *, apply_relu, row_tile=None):
    """3x3 conv, stride 1, padding 1 (optional fused ReLU). NHWC in / NHWC out."""
    N, H, W, Cin = x_nhwc.shape
    Cout = w.shape[-1]

    # Tap grouping (K-packing for the MXU):
    #   Cin small (first layer): full im2col, single dot with K = 9*Cin.
    #   otherwise:               one dot per kernel row, K = 3*Cin.
    if Cin <= 16:
        groups = (tuple((dy, dx) for dy in range(3) for dx in range(3)),)
    else:
        groups = tuple(tuple((dy, dx) for dx in range(3)) for dy in range(3))
    K = len(groups[0]) * Cin
    w_packed = jnp.stack(
        [jnp.concatenate([w[dy, dx] for (dy, dx) in g], axis=0) for g in groups],
        axis=0)                                                   # (G, K, Cout)
    b2 = b.reshape(1, Cout)

    # Row-tile size: keep input tile + K-packed patches + f32 accumulator +
    # output tile (double buffered) around the budget.
    if row_tile is not None and H % row_tile == 0:
        tH = row_tile
    else:
        per_row = 4 * W * (2 * Cin + K + 2 * Cout)
        tH = _largest_divisor_tile(H, per_row, _CONV_TILE_BUDGET)
    n_tiles = H // tH

    kernel = functools.partial(_conv3x3_kernel, groups=groups,
                               apply_relu=apply_relu)

    return pl.pallas_call(
        kernel,
        out_shape=jax.ShapeDtypeStruct((N, H, W, Cout), x_nhwc.dtype),
        grid=(N, n_tiles),
        in_specs=[
            # current row tile
            pl.BlockSpec((1, tH, W, Cin), lambda n, h: (n, h, 0, 0)),
            # halo row above (clamped at the top border; masked in-kernel)
            pl.BlockSpec((1, 1, W, Cin),
                         lambda n, h: (n, jnp.maximum(h * tH - 1, 0), 0, 0)),
            # halo row below (clamped at the bottom border; masked in-kernel)
            pl.BlockSpec((1, 1, W, Cin),
                         lambda n, h: (n, jnp.minimum((h + 1) * tH, H - 1), 0, 0)),
            pl.BlockSpec((len(groups), K, Cout), lambda n, h: (0, 0, 0)),
            pl.BlockSpec((1, Cout), lambda n, h: (0, 0)),
        ],
        out_specs=pl.BlockSpec((1, tH, W, Cout), lambda n, h: (n, h, 0, 0)),
        compiler_params=pltpu.CompilerParams(
            dimension_semantics=("parallel", "parallel"),
            vmem_limit_bytes=_VMEM_LIMIT_BYTES),
    )(x_nhwc, x_nhwc, x_nhwc, w_packed, b2)


# ----------------------------------------------------------------------------
# ReLU (only used when a pre-activation conv output is explicitly requested)
# ----------------------------------------------------------------------------
def _relu_kernel(x_ref, o_ref):
    o_ref[...] = jnp.maximum(x_ref[...], 0.0)


def relu_op(x_nhwc, *, row_tile=None):
    N, H, W, C = x_nhwc.shape
    if row_tile is not None and H % row_tile == 0:
        tH = row_tile
    else:
        per_row = 4 * W * C * 2
        tH = _largest_divisor_tile(H, per_row, _RELU_TILE_BUDGET)
    return pl.pallas_call(
        _relu_kernel,
        out_shape=jax.ShapeDtypeStruct(x_nhwc.shape, x_nhwc.dtype),
        grid=(N, H // tH),
        in_specs=[pl.BlockSpec((1, tH, W, C), lambda n, h: (n, h, 0, 0))],
        out_specs=pl.BlockSpec((1, tH, W, C), lambda n, h: (n, h, 0, 0)),
        compiler_params=pltpu.CompilerParams(
            dimension_semantics=("parallel", "parallel"),
            vmem_limit_bytes=_VMEM_LIMIT_BYTES),
    )(x_nhwc)


# ----------------------------------------------------------------------------
# 2x2 max pooling, stride 2
# ----------------------------------------------------------------------------
def _maxpool_kernel(x_ref, o_ref):
    # x_ref: (1, tP, 2, Wo, 2*C)   o_ref: (1, tP, Wo, C)
    C = o_ref.shape[3]
    r0 = x_ref[0, :, 0, :, :]                    # top rows of the 2x2 windows
    r1 = x_ref[0, :, 1, :, :]                    # bottom rows
    m = jnp.maximum(r0, r1)                      # (tP, Wo, 2*C)
    o_ref[0] = jnp.maximum(m[:, :, :C], m[:, :, C:])


def maxpool2x2(x_nhwc, *, row_tile=None):
    """MaxPool2d(kernel_size=2, stride=2) on NHWC input (floors odd dims)."""
    N, H, W, C = x_nhwc.shape
    Ho, Wo = H // 2, W // 2
    if H % 2 or W % 2:                           # match PyTorch flooring behaviour
        x_nhwc = x_nhwc[:, :2 * Ho, :2 * Wo, :]
    # Layout-compatible (free) reshape: pairs rows and folds column pairs into
    # the lane dim, so the kernel needs no strided slicing.
    x5 = x_nhwc.reshape(N, Ho, 2, Wo, 2 * C)

    if row_tile is not None and Ho % row_tile == 0:
        tP = row_tile
    else:
        per_row = 4 * (2 * W * C + Wo * C)       # 2 input rows + 1 output row
        tP = _largest_divisor_tile(Ho, per_row, _POOL_TILE_BUDGET)

    return pl.pallas_call(
        _maxpool_kernel,
        out_shape=jax.ShapeDtypeStruct((N, Ho, Wo, C), x_nhwc.dtype),
        grid=(N, Ho // tP),
        in_specs=[pl.BlockSpec((1, tP, 2, Wo, 2 * C),
                               lambda n, p: (n, p, 0, 0, 0))],
        out_specs=pl.BlockSpec((1, tP, Wo, C), lambda n, p: (n, p, 0, 0)),
        compiler_params=pltpu.CompilerParams(
            dimension_semantics=("parallel", "parallel"),
            vmem_limit_bytes=_VMEM_LIMIT_BYTES),
    )(x5)


# ----------------------------------------------------------------------------
# VGGExtractor (JAX / Pallas version)
# ----------------------------------------------------------------------------
class NetworkAchitecture(enum.Enum):   # (typo kept from the original module)
    VGG16 = "vgg16"
    VGG19 = "vgg19"


_VGG_CFG = {
    NetworkAchitecture.VGG16: [64, 64, "M", 128, 128, "M", 256, 256, 256, "M",
                               512, 512, 512, "M", 512, 512, 512, "M"],
    NetworkAchitecture.VGG19: [64, 64, "M", 128, 128, "M", 256, 256, 256, 256, "M",
                               512, 512, 512, 512, "M", 512, 512, 512, 512, "M"],
}


def _build_layer_sequence(arch):
    """Layer descriptors (kind, name, cin, cout) mirroring vggXX.features naming."""
    seq = []
    block, conv_i, cin = 1, 1, 3
    for v in _VGG_CFG[arch]:
        if v == "M":
            seq.append(("pool", f"pool{block}", None, None))
            block += 1
            conv_i = 1
        else:
            seq.append(("conv", f"conv{block}_{conv_i}", cin, v))
            seq.append(("relu", f"relu{block}_{conv_i}", None, None))
            cin = v
            conv_i += 1
    return seq


class VGGExtractor:
    def __init__(self, network_architecture, layers, requires_grad=False, seed=0,
                 row_tile=None):
        assert network_architecture in {NetworkAchitecture.VGG16,
                                        NetworkAchitecture.VGG19}, "Invalid network model"
        full_seq = _build_layer_sequence(network_architecture)
        names = [name for _, name, _, _ in full_seq]
        for l in layers:
            if l not in names:
                raise ValueError(f"Layer {l} not in {network_architecture}")
        last = max(names.index(l) for l in layers)
        self.requested = set(layers)
        self.output_layers = [n for n in names[:last + 1] if n in self.requested]
        self.requires_grad = requires_grad
        self.row_tile = row_tile     # None = auto-size tiles from the VMEM budget

        # Deterministic synthetic parameters (no checkpoint load).
        # TODO(synk): torchvision pretrained-weight loading has no in-script equivalent.
        key = jax.random.PRNGKey(seed)
        self.plan = []          # list of (kind, name, w, b)
        for kind, name, cin, cout in full_seq[:last + 1]:
            if kind == "conv":
                key, kw, kb = jax.random.split(key, 3)
                w = jax.random.normal(kw, (3, 3, cin, cout), jnp.float32)
                w = w * (1.0 / np.sqrt(9.0 * cin))
                b = jax.random.normal(kb, (cout,), jnp.float32) * 0.01
                self.plan.append((kind, name, w, b))
            else:
                self.plan.append((kind, name, None, None))

    def __call__(self, x_nchw):
        """x_nchw: (N, 3, H, W) float32 -> dict[name, NCHW feature map]."""
        out = {}
        h = jnp.transpose(x_nchw, (0, 2, 3, 1))   # NCHW -> NHWC
        relu_already_applied = False
        for kind, name, w, b in self.plan:
            if kind == "conv":
                if not self.requires_grad:
                    w = jax.lax.stop_gradient(w)
                    b = jax.lax.stop_gradient(b)
                fuse = name not in self.requested   # fuse ReLU unless pre-act needed
                h = conv3x3(h, w, b, apply_relu=fuse, row_tile=self.row_tile)
                relu_already_applied = fuse
            elif kind == "relu":
                if not relu_already_applied:
                    h = relu_op(h, row_tile=self.row_tile)
                relu_already_applied = False
            else:  # pool
                h = maxpool2x2(h, row_tile=self.row_tile)
            if name in self.requested:
                out[name] = jnp.transpose(h, (0, 3, 1, 2))   # back to NCHW
        return out


# ----------------------------------------------------------------------------
# Pure-JAX reference (correctness sanity check)
# ----------------------------------------------------------------------------
def reference_forward(extractor, x_nchw):
    out = {}
    h = jnp.transpose(x_nchw, (0, 2, 3, 1))
    for kind, name, w, b in extractor.plan:
        if kind == "conv":
            h = jax.lax.conv_general_dilated(
                h, w, window_strides=(1, 1), padding=((1, 1), (1, 1)),
                dimension_numbers=("NHWC", "HWIO", "NHWC")) + b
        elif kind == "relu":
            h = jnp.maximum(h, 0.0)
        else:
            h = jax.lax.reduce_window(h, -jnp.inf, jax.lax.max,
                                      (1, 2, 2, 1), (1, 2, 2, 1), "VALID")
        if name in extractor.requested:
            out[name] = jnp.transpose(h, (0, 3, 1, 2))
    return out


if __name__ == "__main__":
    key = jax.random.PRNGKey(0)
    x = jax.random.normal(key, (2, 3, 16, 16), jnp.float32)   # NCHW, like PyTorch

    layers = {"relu1_2", "pool1", "conv2_1", "relu2_1"}
    # row_tile=4 forces several row tiles per layer even at this toy resolution
    # so the in-kernel halo handling is actually exercised.
    extractor = VGGExtractor(NetworkAchitecture.VGG16, layers, row_tile=4)

    feats = jax.block_until_ready(extractor(x))
    ref = jax.block_until_ready(reference_forward(extractor, x))
    for name in extractor.output_layers:
        assert feats[name].shape == ref[name].shape
        np.testing.assert_allclose(np.asarray(feats[name]), np.asarray(ref[name]),
                                   rtol=1e-2, atol=1e-2)

    print("KERNEL_OK")
</pallas_src>

<mosaic_0001>
module attributes {stable_mosaic.version = 11 : i64} {
  func.func @_conv3x3_kernel(%arg0: i32, %arg1: i32, %arg2: memref<1x4x16x3xf32, #tpu.memory_space<vmem>>, %arg3: memref<1x1x16x3xf32, #tpu.memory_space<vmem>>, %arg4: memref<1x1x16x3xf32, #tpu.memory_space<vmem>>, %arg5: memref<1x27x64xf32, #tpu.memory_space<vmem>>, %arg6: memref<1x64xf32, #tpu.memory_space<vmem>>, %arg7: memref<1x4x16x64xf32, #tpu.memory_space<vmem>>) attributes {dimension_semantics = [#tpu.dimension_semantics<parallel>, #tpu.dimension_semantics<parallel>], iteration_bounds = array<i64: 2, 4>, scalar_prefetch = 0 : i64, scratch_operands = 0 : i64, tpu.core_type = #tpu.core_type<tc>, window_params = [{transform_indices = @transform_0, window_bounds = array<i64: 1, 4, 16, 3>}, {transform_indices = @transform_1, window_bounds = array<i64: 1, 1, 16, 3>}, {transform_indices = @transform_2, window_bounds = array<i64: 1, 1, 16, 3>}, {pipeline_mode = #tpu.pipeline_mode<synchronous>, transform_indices = @transform_3, window_bounds = array<i64: 1, 27, 64>}, {pipeline_mode = #tpu.pipeline_mode<synchronous>, transform_indices = @transform_4, window_bounds = array<i64: 1, 64>}, {transform_indices = @transform_5, window_bounds = array<i64: 1, 4, 16, 64>}]} {
    %c0 = arith.constant 0 : index
    %c0_0 = arith.constant 0 : index
    %c0_1 = arith.constant 0 : index
    %c0_2 = arith.constant 0 : index
    %0 = vector.load %arg2[%c0, %c0_0, %c0_1, %c0_2] : memref<1x4x16x3xf32, #tpu.memory_space<vmem>>, vector<1x4x16x3xf32>
    %1 = vector.shape_cast %0 : vector<1x4x16x3xf32> to vector<4x16x3xf32>
    %c0_3 = arith.constant 0 : index
    %c0_4 = arith.constant 0 : index
    %c0_5 = arith.constant 0 : index
    %c0_6 = arith.constant 0 : index
    %2 = vector.load %arg3[%c0_3, %c0_4, %c0_5, %c0_6] : memref<1x1x16x3xf32, #tpu.memory_space<vmem>>, vector<1x1x16x3xf32>
    %3 = vector.shape_cast %2 : vector<1x1x16x3xf32> to vector<16x3xf32>
    %c0_7 = arith.constant 0 : index
    %c0_8 = arith.constant 0 : index
    %c0_9 = arith.constant 0 : index
    %c0_10 = arith.constant 0 : index
    %4 = vector.load %arg4[%c0_7, %c0_8, %c0_9, %c0_10] : memref<1x1x16x3xf32, #tpu.memory_space<vmem>>, vector<1x1x16x3xf32>
    %5 = vector.shape_cast %4 : vector<1x1x16x3xf32> to vector<16x3xf32>
    %c0_i32 = arith.constant 0 : i32
    %6 = arith.cmpi sgt, %arg1, %c0_i32 : i32
    %cst = arith.constant 0.000000e+00 : f32
    %7 = vector.broadcast %cst : f32 to vector<16x3xf32>
    %8 = arith.select %6, %3, %7 : vector<16x3xf32>
    %c3_i32 = arith.constant 3 : i32
    %9 = arith.cmpi slt, %arg1, %c3_i32 : i32
    %cst_11 = arith.constant 0.000000e+00 : f32
    %10 = vector.broadcast %cst_11 : f32 to vector<16x3xf32>
    %11 = arith.select %9, %5, %10 : vector<16x3xf32>
    %12 = vector.shape_cast %8 : vector<16x3xf32> to vector<1x16x3xf32>
    %13 = vector.shape_cast %11 : vector<16x3xf32> to vector<1x16x3xf32>
    %14 = tpu.concatenate %12, %1, %13 in 0 : vector<1x16x3xf32>, vector<4x16x3xf32>, vector<1x16x3xf32> -> vector<6x16x3xf32>
    %cst_12 = arith.constant 0.000000e+00 : f32
    %15 = vector.broadcast %cst_12 : f32 to vector<6x1x3xf32>
    %16 = tpu.concatenate %15, %14, %15 in 1 : vector<6x1x3xf32>, vector<6x16x3xf32>, vector<6x1x3xf32> -> vector<6x18x3xf32>
    %c0_13 = arith.constant 0 : index
    %c0_14 = arith.constant 0 : index
    %17 = vector.load %arg6[%c0_13, %c0_14] : memref<1x64xf32, #tpu.memory_space<vmem>>, vector<1x64xf32>
    %18 = vector.shape_cast %17 : vector<1x64xf32> to vector<1x64xf32>
    %19 = vector.broadcast %18 : vector<1x64xf32> to vector<64x64xf32>
    %20 = vector.extract_strided_slice %16 {offsets = [0, 0, 0], sizes = [4, 16, 3], strides = [1, 1, 1]} : vector<6x18x3xf32> to vector<4x16x3xf32>
    %21 = vector.extract_strided_slice %16 {offsets = [0, 1, 0], sizes = [4, 16, 3], strides = [1, 1, 1]} : vector<6x18x3xf32> to vector<4x16x3xf32>
    %22 = vector.extract_strided_slice %16 {offsets = [0, 2, 0], sizes = [4, 16, 3], strides = [1, 1, 1]} : vector<6x18x3xf32> to vector<4x16x3xf32>
    %23 = vector.extract_strided_slice %16 {offsets = [1, 0, 0], sizes = [4, 16, 3], strides = [1, 1, 1]} : vector<6x18x3xf32> to vector<4x16x3xf32>
    %24 = vector.extract_strided_slice %16 {offsets = [1, 1, 0], sizes = [4, 16, 3], strides = [1, 1, 1]} : vector<6x18x3xf32> to vector<4x16x3xf32>
    %25 = vector.extract_strided_slice %16 {offsets = [1, 2, 0], sizes = [4, 16, 3], strides = [1, 1, 1]} : vector<6x18x3xf32> to vector<4x16x3xf32>
    %26 = vector.extract_strided_slice %16 {offsets = [2, 0, 0], sizes = [4, 16, 3], strides = [1, 1, 1]} : vector<6x18x3xf32> to vector<4x16x3xf32>
    %27 = vector.extract_strided_slice %16 {offsets = [2, 1, 0], sizes = [4, 16, 3], strides = [1, 1, 1]} : vector<6x18x3xf32> to vector<4x16x3xf32>
    %28 = vector.extract_strided_slice %16 {offsets = [2, 2, 0], sizes = [4, 16, 3], strides = [1, 1, 1]} : vector<6x18x3xf32> to vector<4x16x3xf32>
    %29 = tpu.concatenate %20, %21, %22, %23, %24, %25, %26, %27, %28 in 2 : vector<4x16x3xf32>, vector<4x16x3xf32>, vector<4x16x3xf32>, vector<4x16x3xf32>, vector<4x16x3xf32>, vector<4x16x3xf32>, vector<4x16x3xf32>, vector<4x16x3xf32>, vector<4x16x3xf32> -> vector<4x16x27xf32>
    %30 = vector.shape_cast %29 : vector<4x16x27xf32> to vector<64x27xf32>
    %c0_15 = arith.constant 0 : index
    %c0_16 = arith.constant 0 : index
    %c0_17 = arith.constant 0 : index
    %31 = vector.load %arg5[%c0_15, %c0_16, %c0_17] : memref<1x27x64xf32, #tpu.memory_space<vmem>>, vector<1x27x64xf32>
    %32 = vector.shape_cast %31 : vector<1x27x64xf32> to vector<27x64xf32>
    %cst_18 = arith.constant dense<0.000000e+00> : vector<64x64xf32>
    %33 = tpu.matmul %30, %32, %cst_18 {dimension_numbers = #tpu.dot_dimension_numbers<[1], [0], [0], [1], [0, 0, 1, 1], [], []>} : vector<64x27xf32>, vector<27x64xf32>, vector<64x64xf32> -> vector<64x64xf32>
    %34 = arith.addf %19, %33 : vector<64x64xf32>
    %cst_19 = arith.constant 0.000000e+00 : f32
    %35 = vector.broadcast %cst_19 : f32 to vector<64x64xf32>
    %36 = arith.maximumf %34, %35 : vector<64x64xf32>
    %37 = vector.shape_cast %36 : vector<64x64xf32> to vector<4x16x64xf32>
    %c0_20 = arith.constant 0 : index
    %c0_21 = arith.constant 0 : index
    %c0_22 = arith.constant 0 : index
    %c0_23 = arith.constant 0 : index
    %38 = vector.load %arg7[%c0_20, %c0_21, %c0_22, %c0_23] : memref<1x4x16x64xf32, #tpu.memory_space<vmem>>, vector<1x4x16x64xf32>
    %39 = vector.shape_cast %38 : vector<1x4x16x64xf32> to vector<4x16x64xf32>
    %40 = vector.shape_cast %37 : vector<4x16x64xf32> to vector<1x4x16x64xf32>
    tpu.vector_store %arg7[%c0_20, %c0_21, %c0_22, %c0_23], %40 {strides = array<i32>} : memref<1x4x16x64xf32, #tpu.memory_space<vmem>>, vector<1x4x16x64xf32>,
    return
  }
  func.func @transform_0(%arg0: i32, %arg1: i32) -> (i32, i32, i32, i32) {
    %c0_i32 = arith.constant 0 : i32
    %c0_i32_0 = arith.constant 0 : i32
    %c0_i32_1 = arith.constant 0 : i32
    return %arg0, %arg1, %c0_i32, %c0_i32_0 : i32, i32, i32, i32
  }
  func.func @transform_1(%arg0: i32, %arg1: i32) -> (i32, i32, i32, i32) {
    %c4_i32 = arith.constant 4 : i32
    %0 = arith.muli %arg1, %c4_i32 : i32
    %c1_i32 = arith.constant 1 : i32
    %1 = arith.subi %0, %c1_i32 : i32
    %c0_i32 = arith.constant 0 : i32
    %2 = arith.maxsi %1, %c0_i32 : i32
    %c0_i32_0 = arith.constant 0 : i32
    %c0_i32_1 = arith.constant 0 : i32
    %c0_i32_2 = arith.constant 0 : i32
    return %arg0, %2, %c0_i32_0, %c0_i32_1 : i32, i32, i32, i32
  }
  func.func @transform_2(%arg0: i32, %arg1: i32) -> (i32, i32, i32, i32) {
    %c1_i32 = arith.constant 1 : i32
    %0 = arith.addi %arg1, %c1_i32 : i32
    %c4_i32 = arith.constant 4 : i32
    %1 = arith.muli %0, %c4_i32 : i32
    %c15_i32 = arith.constant 15 : i32
    %2 = arith.minsi %1, %c15_i32 : i32
    %c0_i32 = arith.constant 0 : i32
    %c0_i32_0 = arith.constant 0 : i32
    %c0_i32_1 = arith.constant 0 : i32
    return %arg0, %2, %c0_i32, %c0_i32_0 : i32, i32, i32, i32
  }
  func.func @transform_3(%arg0: i32, %arg1: i32) -> (i32, i32, i32) {
    %c0_i32 = arith.constant 0 : i32
    %c0_i32_0 = arith.constant 0 : i32
    %c0_i32_1 = arith.constant 0 : i32
    %c0_i32_2 = arith.constant 0 : i32
    return %c0_i32, %c0_i32_0, %c0_i32_1 : i32, i32, i32
  }
  func.func @transform_4(%arg0: i32, %arg1: i32) -> (i32, i32) {
    %c0_i32 = arith.constant 0 : i32
    %c0_i32_0 = arith.constant 0 : i32
    %c0_i32_1 = arith.constant 0 : i32
    return %c0_i32, %c0_i32_0 : i32, i32
  }
  func.func @transform_5(%arg0: i32, %arg1: i32) -> (i32, i32, i32, i32) {
    %c0_i32 = arith.constant 0 : i32
    %c0_i32_0 = arith.constant 0 : i32
    %c0_i32_1 = arith.constant 0 : i32
    return %arg0, %arg1, %c0_i32, %c0_i32_0 : i32, i32, i32, i32
  }
}

</mosaic_0001>

<bundles_post_ra>
// kernel: tpu_custom_call.1
= control target key start
LH: loop header
LB: loop body
LE: loop exit
PB: predicated region body
PF: predicated region fallthrough
CT: control target
= control target key end

     0   :  { %10 = vsyncpa [#allocation3], 0  ;;  %s2020_s0 = inlined_call_operand.vmem [shape: f32[2,16,16,3], index: 0, kind: input, shape index: {}]   ;;  %s2021_s1 = inlined_call_operand.vmem [shape: f32[2,16,16,3], index: 1, kind: input, shape index: {}]   ;;  %s2022_s2 = inlined_call_operand.vmem [shape: f32[2,16,16,3], index: 2, kind: input, shape index: {}]   ;;  %s2023_s3 = inlined_call_operand.vmem [shape: f32[1,27,64], index: 3, kind: input, shape index: {}]   ;;  %s2024_s4 = inlined_call_operand.vmem [shape: f32[1,64], index: 4, kind: input, shape index: {}]   ;;  %s2025_s5 = inlined_call_operand.hbm [shape: f32[2,16,16,64], index: 5, kind: output, shape index: {}]  }
   0x1   :  { %12 = vsyncpa [#allocation3 + $0x1], 0  ;;  %s1453_s18 = smov 0   ;;  %s1455_s19 = smov 0  }
   0x2   :  { %s1457_s20 = smov 0   ;;  %s1459_s21 = smov 0  }
   0x3   :  { %s1461_s22 = smov 0   ;;  %s1463_s23 = smov 0  }
   0x4   :  { %s1465_s24 = smov 0   ;;  %s1467_s25 = smov 0  }
   0x5 LB: > { %s1116_s26 = sadd.s32 4294967295, %s1409_s25   ;;  %s1117_s27 = sadd.s32 4294967294, %s1409_s25   ;;  %s1409_s25 = sphi %s1467_s25, %s18_s25   ;;  %s1405_s24 = sphi %s1465_s24, %s2035_s24   ;;  %s1401_s23 = sphi %s1463_s23, %s2034_s23   ;;  %s1397_s22 = sphi %s1461_s22, %s2033_s22   ;;  %s1393_s21 = sphi %s1459_s21, %s2032_s21   ;;  %s1389_s20 = sphi %s1457_s20, %s2031_s20   ;;  %s1385_s19 = sphi %s1455_s19, %s2030_s19   ;;  %s1381_s18 = sphi %s1453_s18, %s2029_s18  }
   0x6   : > { %s27_s28 = sadd.s32 1, %s1401_s23  ;;  %s30_s29 = sadd.s32 1, %s1405_s24 }
   0x7   : > { %p28_p0 = scmp.ge.s32.totalorder %s27_s28, 4  ;;  %p191_p1 = scmp.ne.s32.totalorder %s1389_s20, %s1385_s19 }
   0x8   : > { %p192_p2 = scmp.eq.s32.totalorder %s1116_s26, 7  ;;  %p197_p5 = scmp.ne.s32.totalorder %s1385_s19, %s1381_s18 }
   0x9   : > { %s2037_s28 = smov (%p28_p0, %s27_s28), 0  ;;  %s2039_s29 = smov (!%p28_p0, %s30_s29), %s1405_s24 }
   0xa   : > { %s177_s30 = ssub.s32 %s1401_s23, %s2037_s28  ;;  %p1504_p3 = por %p192_p2, %p191_p1 }
   0xb   : > { %p32_p4 = scmp.ge.s32.totalorder %s2039_s29, 2  ;;  %p198_p6 = scmp.eq.s32.totalorder %s1117_s27, 7 }
   0xc   : > { %p1126_p7 = scmp.ge.s32.totalorder %s1409_s25, 1  ;;  %p276_p9 = scmp.lt.s32.totalorder %s1409_s25, 9 }
   0xd   : > { %s2041_s29 = smov (%p32_p4, %s2039_s29), 0  ;;  %p1513_p8 = por %p198_p6, %p197_p5 }
   0xe   : > { %s176_s8 = ssub.s32 %s1405_s24, %s2041_s29  ;;  %s181_s9 = sadd.s32 1, %s1389_s20 }
   0xf   : > { %s178_s10 = sor.u32 %s177_s30, %s176_s8  ;;  %p277_p10 = pnand %p1126_p7, %p276_p9 }
  0x10   : > { %p179_p11 = scmp.eq.s32.totalorder %s178_s10, 0  ;;  %s1525_s12 = sshll.u32 (!%p277_p10), %s1393_s21, 2  ;;  %vm417_vm0 = vcmask (!%p277_p10), 1040384   ;;  %vm479_vm1 = vcmask (!%p277_p10), 1046528   ;;  %vm524_vm2 = vcmask (!%p277_p10), 1045504   ;;  %vm838_vm3 = vcmask (!%p277_p10), 1042432  }
  0x11   : > { %280 = sbr.rel (%p277_p10) target bundleno = 508 (0x1fc), region = 40  ;;  %p336_p12 = scmp.lt.s32.totalorder (!%p277_p10), %s1397_s22, 1  ;;  %vm1418_vm4 = vmmov (!%p277_p10), 1   ;;  %vm746_vm6 = vcmask (!%p277_p10), 48128   ;;  %vm737_vm7 = vcmask (!%p277_p10), 23552   ;;  %vm755_vm8 = vcmask (!%p277_p10), 72704  }
  0x12   : > { %s1522_s11 = scalar_select %p179_p11, %s1389_s20, %s181_s9  }
  0x13   : > { %p338_p13 = scmp.lt.s32.totalorder (!%p277_p10), %s1525_s12, 15  ;;  %s1133_s26 = sadd.s32 (!%p277_p10), 4294967295, %s1525_s12  ;;  %vm1212_vm5 = vmpackc.low (!%p277_p10), %vm838_vm3, %vm1418_vm4  ;;  %vm764_vm9 = vcmask (!%p277_p10), 97280   ;;  %vm773_vm10 = vcmask (!%p277_p10), 121856   ;;  %vm782_vm11 = vcmask (!%p277_p10), 146432   ;;  %vm791_vm12 = vcmask (!%p277_p10), 171008  }
  0x14   : > { %p348_p0 = scmp.gt.s32.totalorder (!%p277_p10), %s1133_s26, 0  ;;  %p1134_p1 = scmp.lt.s32.totalorder (!%p277_p10), %s1133_s26, 15  ;;  %vm800_vm13 = vcmask (!%p277_p10), 195584   ;;  %vm813_vm14 = vcmask (!%p277_p10), 220160   ;;  %vm963_vm15 = vcmask (!%p277_p10), 523264  }
  0x15   : > { %p393_p2 = scmp.gt.s32.totalorder (!%p277_p10), %s1393_s21, 0  ;;  %s1412_s8 = smov (!%p277_p10), 3  }
  0x16   : > { %p399_p5 = scmp.lt.s32.totalorder (!%p277_p10), %s1393_s21, 3 }
  0x18   : > { %s337_s13 = scalar_select %p336_p12, %s1397_s22, 1 }
  0x19   : > { %s339_s14 = scalar_select %p338_p13, %s1525_s12, 15 }
  0x1a   : > { %s1531_s15 = sshll.u32 %s337_s13, 5  ;;  %s1411_s13 = smov 9  }
  0x1b   : > { %s1129_s16 = sshll.u32 %s339_s14, 1 }
  0x1c   : > { %s342_s17 = sadd.s32 %s1531_s15, %s1129_s16 }
  0x1d   : > { %s1131_s27 = sshll.u32 %s342_s17, 3 }
  0x1e   : > { %s1538_s9 = scalar_lea.vmem %s2020_s0, %s1131_s27 }
  0x1f   : > { %v1541_v0 = vld [vmem:[%s1538_s9 + $0x20] sm:$0xff]  ;;  %v383_v2 = vld [vmem:[%s1538_s9 + $0x10] sm:$0xff]  ;;  %s349_s10 = scalar_select %p348_p0, %s1133_s26, 0  ;;  %v384_v5 = vld [vmem:[%s1538_s9 + $0x18] sm:$0xff] }
  0x20   : > { %v381_v1 = vld [vmem:[%s1538_s9] sm:$0xff]  ;;  %v427_v3 = vrot.slane %v1541_v0, 7  ;;  %v424_v6 = vrot.slane %v383_v2, 7  ;;  %v1548_v7 = vld [vmem:[%s1538_s9 + $0x8] sm:$0xff]  ;;  %v425_v8 = vrot.slane %v384_v5, 7  ;;  %v387_v27 = vld [vmem:[%s1538_s9 + $0x30] sm:$0xff] }
  0x21   : > { %v421_v4 = vrot.slane %v381_v1, 7  ;;  %v422_v9 = vrot.slane %v1548_v7, 7  ;;  %s2043_s10 = smov (!%p1134_p1, %s349_s10), 15  ;;  %v386_v25 = vld [vmem:[%s1538_s9 + $0x28] sm:$0xff]  ;;  %v430_v34 = vrot.slane %v387_v27, 7  ;;  %v388_v35 = vld [vmem:[%s1538_s9 + $0x38] sm:$0xff] }
  0x22   : > { %v1556_v10 = vsel %vm417_vm0, 0.0, %v427_v3  ;;  %v1562_v12 = vsel %vm417_vm0, 0.0, %v424_v6  ;;  %v1569_v13 = vsel %vm417_vm0, %v424_v6, %v425_v8  ;;  %v460_v14 = vsel %vm417_vm0, %v425_v8, 0.0  ;;  %s1139_s14 = sshll.u32 %s2043_s10, 1 }
  0x23   : > { %v1559_v11 = vsel %vm417_vm0, 0.0, %v421_v4  ;;  %578 = vrot.lane.b32.xlu1 %v1556_v10, %s1411_s13  ;;  %v1575_v15 = vsel %vm417_vm0, %v421_v4, %v422_v9  ;;  %v535_v16 = vrot.slane %v1562_v12, 2  ;;  %v491_v17 = vrot.slane %v1569_v13, 1  ;;  %s356_s16 = sadd.s32 %s1139_s14, %s1531_s15  ;;  %s1173_s14 = sadd.s32 4, %s1525_s12 }
  0x24   : > { %570 = vrot.lane.b32.xlu0 %v1559_v11, %s1411_s13  ;;  %v493_v18 = vrot.slane %v460_v14, 1  ;;  %v536_v19 = vrot.slane %v1569_v13, 2  ;;  %v490_v20 = vrot.slane %v1562_v12, 1  ;;  %s1141_s17 = sshll.u32 %s356_s16, 3  ;;  %v538_v24 = vrot.slane %v460_v14, 2  ;;  %s1413_s16 = smov 6  }
  0x25   : > { %s358_s30 = scalar_lea.vmem %s2021_s1, %s1141_s17  ;;  %v428_v31 = vrot.slane %v386_v25, 7  ;;  %p1607_p4 = scmp.lt.s32.totalorder %s1173_s14, 15  ;;  %v431_v44 = vrot.slane %v388_v35, 7  ;;  %v1641_v48 = vsel %vm417_vm0, 0.0, %v430_v34  ;;  %v495_v58 = vrot.slane %v1556_v10, 1 }
  0x26   : > { %v1583_v21 = vsel %vm479_vm1, %v491_v17, %v493_v18  ;;  %s1304_s10 = scalar_select %p393_p2, 255, 0  ;;  %v1595_v22 = vsel %vm524_vm2, %v535_v16, %v536_v19  ;;  %v1598_v23 = vsel %vm479_vm1, %v490_v20, %v491_v17  ;;  %v1613_v32 = vsel %vm524_vm2, %v536_v19, %v538_v24 }
  0x27   : > { %510 = vrot.lane.b32.xlu1 %v1583_v21, %s1412_s8  ;;  %s2045_s14 = smov (!%p1607_p4, %s1173_s14), 15  ;;  %v1634_v42 = vsel %vm417_vm0, %v427_v3, %v428_v31  ;;  %v1645_v49 = vsel %vm417_vm0, %v430_v34, %v431_v44  ;;  %v595_v50 = vrot.slane %v1641_v48, 1  ;;  %v462_v51 = vsel %vm417_vm0, %v431_v44, 0.0  ;;  %s1415_s17 = smov 15  }
  0x28   : > { %572 = vrot.lane.b32.xlu0 %v1575_v15, %s1411_s13  ;;  %v1305_v26 = vld [vmem:[%s358_s30] sm:%s1304_s10]  ;;  %s2047_s14 = smov (!%p1607_p4, %s2045_s14), 15  ;;  %v624_v52 = vrot.slane %v1641_v48, 2  ;;  %v596_v53 = vrot.slane %v1645_v49, 1  ;;  %v598_v54 = vrot.slane %v462_v51, 1  ;;  %v625_v55 = vrot.slane %v1645_v49, 2 }
  0x29   : > { %v1308_v28 = vld [vmem:[%s358_s30 + $0x8] sm:%s1304_s10]  ;;  %v418_v29 = vrot.slane %v1305_v26, 7  ;;  %s1146_s12 = sshll.u32 %s2047_s14, 1  ;;  %v627_v56 = vrot.slane %v462_v51, 2  ;;  %v496_v59 = vrot.slane %v1634_v42, 1  ;;  %v485_v1 = vrot.slane %v1559_v11, 1 }
  0x2a   : > { %v419_v30 = vrot.slane %v1308_v28, 7  ;;  %s373_s9 = sadd.s32 %s1146_s12, %s1531_s15  ;;  %v1659_v60 = vsel %vm479_vm1, %v595_v50, %v596_v53  ;;  %v1662_v61 = vsel %vm479_vm1, %v596_v53, %v598_v54  ;;  %v1665_v62 = vsel %vm524_vm2, %v624_v52, %v625_v55  ;;  %s1414_s14 = smov 12   ;;  %v810_v52 = vld [vmem:[%s2023_s3 + $0x8] sm:$0xff]  ;;  %v812_v54 = vld [vmem:[%s2023_s3 + $0x18] sm:$0x7] }
  0x2b   : > { %553 = vrot.lane.b32.xlu1 %v1595_v22, %s1413_s16  ;;  %v1616_v33 = vsel %vm417_vm0, 0.0, %v418_v29  ;;  %s1148_s26 = sshll.u32 %s373_s9, 3  ;;  %v1668_v63 = vsel %vm524_vm2, %v625_v55, %v627_v56  ;;  %v486_v2 = vrot.slane %v1575_v15, 1  ;;  %v461_v3 = vsel %vm417_vm0, %v428_v31, 0.0  ;;  %s1416_s12 = smov 18  }
  0x2c   : > { %508 = vrot.lane.b32.xlu0 %v1598_v23, %s1412_s8  ;;  %v1620_v36 = vsel %vm417_vm0, %v418_v29, %v419_v30  ;;  %v480_v37 = vrot.slane %v1616_v33, 1  ;;  %v525_v38 = vrot.slane %v1616_v33, 2  ;;  %v458_v39 = vsel %vm417_vm0, %v419_v30, 0.0  ;;  %s375_s30 = scalar_lea.vmem %s2022_s2, %s1148_s26  ;;  %s1174_s26 = sshll.u32 %s1393_s21, 3 }
  0x2d   : > { %v481_v40 = vrot.slane %v1620_v36, 1  ;;  %v526_v41 = vrot.slane %v1620_v36, 2  ;;  %v483_v43 = vrot.slane %v458_v39, 1  ;;  %v528_v47 = vrot.slane %v458_v39, 2  ;;  %s1310_s10 = scalar_select %p399_p5, 255, 0 }
  0x2e   : > { %v1682_v5 = vsel %vm479_vm1, %v495_v58, %v496_v59  ;;  %v487_v16 = vsel %vm479_vm1, %v485_v1, %v486_v2  ;;  %v498_v17 = vrot.slane %v461_v3, 1  ;;  %v459_v18 = vsel %vm417_vm0, %v422_v9, 0.0  ;;  %s1162_s15 = sshll.u32 %s1397_s22, 5 }
  0x2f   : > { %555 = vrot.lane.b32.xlu1 %v1613_v32, %s1413_s16  ;;  %v482_v45 = vsel %vm479_vm1, %v480_v37, %v481_v40  ;;  %v527_v46 = vsel %vm524_vm2, %v525_v38, %v526_v41  ;;  %v484_v57 = vsel %vm479_vm1, %v481_v40, %v483_v43  ;;  %v529_v0 = vsel %vm524_vm2, %v526_v41, %v528_v47  ;;  %v1311_v4 = vld [vmem:[%s375_s30] sm:%s1310_s10]  ;;  %s986_s27 = sadd.s32 %s1174_s26, %s1162_s15 }
  0x30   : > { %500 = vrot.lane.b32.xlu0 %v482_v45, %s1412_s8  ;;  %v1314_v6 = vld [vmem:[%s375_s30 + $0x8] sm:%s1310_s10]  ;;  %v433_v8 = vrot.slane %v1311_v4, 7  ;;  %v488_v29 = vrot.slane %v459_v18, 1  ;;  %v1718_v37 = vsel %vm479_vm1, %v496_v59, %v498_v17  ;;  %v540_v38 = vrot.slane %v1556_v10, 2 }
  0x31   : > { %v434_v14 = vrot.slane %v1314_v6, 7  ;;  %v541_v39 = vrot.slane %v1634_v42, 2  ;;  %v530_v41 = vrot.slane %v1559_v11, 2  ;;  %v531_v43 = vrot.slane %v1575_v15, 2 }
  0x32   : > { %v1690_v19 = vsel %vm417_vm0, 0.0, %v433_v8  ;;  %v489_v40 = vsel %vm479_vm1, %v486_v2, %v488_v29  ;;  %v533_v47 = vrot.slane %v459_v18, 2 }
  0x33   : > { %580 = vrot.lane.b32.xlu1 %v1634_v42, %s1411_s13  ;;  %v679_v20 = vrot.slane %v1690_v19, 1  ;;  %v708_v24 = vrot.slane %v1690_v19, 2  ;;  %v1697_v25 = vsel %vm417_vm0, %v433_v8, %v434_v14  ;;  %v463_v26 = vsel %vm417_vm0, %v434_v14, 0.0 }
  0x34   : > { %545 = vrot.lane.b32.xlu0 %v527_v46, %s1413_s16  ;;  %v680_v7 = vrot.slane %v1697_v25, 1  ;;  %v709_v9 = vrot.slane %v1697_v25, 2  ;;  %v682_v27 = vrot.slane %v463_v26, 1  ;;  %v711_v28 = vrot.slane %v463_v26, 2 }
  0x35   : > { %v1729_v44 = vsel %vm524_vm2, %v540_v38, %v541_v39  ;;  %v532_v45 = vsel %vm524_vm2, %v530_v41, %v531_v43  ;;  %v543_v46 = vrot.slane %v461_v3, 2  ;;  %v534_v51 = vsel %vm524_vm2, %v531_v43, %v533_v47 }
  0x36   : > { %v1704_v30 = vsel %vm479_vm1, %v679_v20, %v680_v7  ;;  %v1707_v31 = vsel %vm479_vm1, %v680_v7, %v682_v27  ;;  %v1710_v34 = vsel %vm524_vm2, %v708_v24, %v709_v9  ;;  %v1713_v35 = vsel %vm524_vm2, %v709_v9, %v711_v28 }
  0x37   : > { %502 = vrot.lane.b32.xlu1 %v484_v57, %s1412_s8  ;;  %v1742_v50 = vsel %vm524_vm2, %v541_v39, %v543_v46 }
  0x38   : > { %547 = vrot.lane.b32.xlu0 %v529_v0, %s1413_s16 }
  0x3b   : > { %608 = vrot.lane.b32.xlu1 %v1682_v5, %s1414_s14 }
  0x3c   : > { %600 = vrot.lane.b32.xlu0 %v487_v16, %s1414_s14 }
  0x3f   : > { %512 = vrot.lane.b32.xlu1 %v1682_v5, %s1412_s8 }
  0x40   : > { %504 = vrot.lane.b32.xlu0 %v487_v16, %s1412_s8 }
  0x43   : > { %610 = vrot.lane.b32.xlu1 %v1718_v37, %s1414_s14 }
  0x44   : > { %602 = vrot.lane.b32.xlu0 %v489_v40, %s1414_s14 }
  0x47   : > { %637 = vrot.lane.b32.xlu1 %v1729_v44, %s1415_s17 }
  0x48   : > { %629 = vrot.lane.b32.xlu0 %v532_v45, %s1415_s17 }
  0x4b   : > { %514 = vrot.lane.b32.xlu1 %v1718_v37, %s1412_s8 }
  0x4c   : > { %506 = vrot.lane.b32.xlu0 %v489_v40, %s1412_s8  ;;  %s1417_s8 = smov 21  }
  0x4f   : > { %557 = vrot.lane.b32.xlu1 %v1729_v44, %s1413_s16 }
  0x50   : > { %549 = vrot.lane.b32.xlu0 %v532_v45, %s1413_s16 }
  0x53   : > { %639 = vrot.lane.b32.xlu1 %v1742_v50, %s1415_s17 }
  0x54   : > { %631 = vrot.lane.b32.xlu0 %v534_v51, %s1415_s17 }
  0x57   : > { %662 = vrot.lane.b32.xlu1 %v1641_v48, %s1416_s12 }
  0x58   : > { %654 = vrot.lane.b32.xlu0 %v1562_v12, %s1416_s12 }
  0x5b   : > { %559 = vrot.lane.b32.xlu1 %v1742_v50, %s1413_s16 }
  0x5c   : > { %551 = vrot.lane.b32.xlu0 %v534_v51, %s1413_s16  ;;  %s1419_s16 = smov 24  }
  0x5f   : > { %582 = vrot.lane.b32.xlu1 %v1641_v48, %s1411_s13  ;;  %v809_v48 = vld [vmem:[%s2023_s3] sm:$0xff] }
  0x60   : > { %574 = vrot.lane.b32.xlu0 %v1562_v12, %s1411_s13  ;;  %v1207_v53 = vpack.c.bf16 %v810_v52, %v809_v48 }
  0x62   : > { %1208 = vmatprep.subr.bf16.mxu0 %v1207_v53  ;;  %1217 = vmatprep.subr.bf16.mxu1 %v1207_v53 }
  0x63   : > { %664 = vrot.lane.b32.xlu1 %v1645_v49, %s1416_s12  ;;  %1210 = vmatpush3.bf16.msra.mxu0 %v1207_v53 }
  0x64   : > { %656 = vrot.lane.b32.xlu0 %v1569_v13, %s1416_s12  ;;  %1219 = vmatpush3.bf16.msra.mxu1 %v1207_v53 }
  0x67   : > { %692 = vrot.lane.b32.xlu1 %v1659_v60, %s1417_s8 }
  0x68   : > { %684 = vrot.lane.b32.xlu0 %v1598_v23, %s1417_s8 }
  0x6b   : > { %584 = vrot.lane.b32.xlu1 %v1645_v49, %s1411_s13  ;;  %v811_v49 = vld [vmem:[%s2023_s3 + $0x10] sm:$0xff] }
  0x6c   : > { %576 = vrot.lane.b32.xlu0 %v1569_v13, %s1411_s13  ;;  %v1211_v55 = vpack.c.bf16 %v812_v54, %v811_v49  ;;  %s1163_s13 = sshll.u32 %s986_s27, 7 }
  0x6d   : > { %s1959_s10 = scalar_lea.hbm %s2025_s5, %s1163_s13 }
  0x6e   : > { %1213 = vmatprep.subr.msk.bf16.mxu0 %vm1212_vm5, %v1211_v55  ;;  %1218 = vmatprep.subr.msk.bf16.mxu1 %vm1212_vm5, %v1211_v55 }
  0x6f   : > { %612 = vrot.lane.b32.xlu1 %v1659_v60, %s1414_s14  ;;  %1216 = vmatpush3.bf16.msk.msra.mxu0 %vm1212_vm5, %v1211_v55 }
  0x70   : > { %604 = vrot.lane.b32.xlu0 %v1598_v23, %s1414_s14  ;;  %1220 = vmatpush3.bf16.msk.msra.mxu1 %vm1212_vm5, %v1211_v55 }
  0x73   : > { %694 = vrot.lane.b32.xlu1 %v1662_v61, %s1417_s8 }
  0x74   : > { %686 = vrot.lane.b32.xlu0 %v1583_v21, %s1417_s8 }
  0x77   : > { %721 = vrot.lane.b32.xlu1 %v1665_v62, %s1419_s16 }
  0x78   : > { %713 = vrot.lane.b32.xlu0 %v1595_v22, %s1419_s16 }
  0x7b   : > { %614 = vrot.lane.b32.xlu1 %v1662_v61, %s1414_s14 }
  0x7c   : > { %606 = vrot.lane.b32.xlu0 %v1583_v21, %s1414_s14  ;;  %s332_s14 = sand.u32 1, %s1385_s19  }
  0x7f   : > { %641 = vrot.lane.b32.xlu1 %v1665_v62, %s1415_s17 }
  0x80   : > { %633 = vrot.lane.b32.xlu0 %v1595_v22, %s1415_s17 }
  0x83   : > { %723 = vrot.lane.b32.xlu1 %v1668_v63, %s1419_s16 }
  0x84   : > { %715 = vrot.lane.b32.xlu0 %v1613_v32, %s1419_s16 }
  0x87   : > { %643 = vrot.lane.b32.xlu1 %v1668_v63, %s1415_s17 }
  0x88   : > { %635 = vrot.lane.b32.xlu0 %v1613_v32, %s1415_s17 }
  0x8b   : > { %666 = vrot.lane.b32.xlu1 %v1690_v19, %s1416_s12 }
  0x8c   : > { %658 = vrot.lane.b32.xlu0 %v1556_v10, %s1416_s12 }
  0x8f   : > { %668 = vrot.lane.b32.xlu1 %v1697_v25, %s1416_s12 }
  0x90   : > { %660 = vrot.lane.b32.xlu0 %v1634_v42, %s1416_s12  ;;  %s1420_s12 = smov [#allocation2]  }
  0x93   : > { %696 = vrot.lane.b32.xlu1 %v1704_v30, %s1417_s8 }
  0x94   : > { %688 = vrot.lane.b32.xlu0 %v1682_v5, %s1417_s8 }
  0x95   : > { %v579_v21 = vpop.permute.xlu1 %578 }
  0x96   : > { %v571_v22 = vpop.permute.xlu0 %570 }
  0x97   : > { %698 = vrot.lane.b32.xlu1 %v1707_v31, %s1417_s8 }
  0x98   : > { %690 = vrot.lane.b32.xlu0 %v1718_v37, %s1417_s8  ;;  %s1127_s8 = sshll.u32 %s332_s14, 6 }
  0x99   : > { %v511_v23 = vpop.permute.xlu1 %510  ;;  %s334_s9 = scalar_lea.vmem [#allocation2], %s1127_s8  ;;  %s1319_s8 = sshll.u32 %s1420_s12, 4  ;;  %s1320_s8 = int_to_ptr.vmem [resolvable:$false] %s1319_s8 }
  0x9a   : > { %v573_v32 = vpop.permute.xlu0 %572  ;;  %v743_v61 = vsel %vm737_vm7, %v1569_v13, %v511_v23  ;;  %s989_s30 = sshll.u32 %s334_s9, 4  ;;  %s1321_s26 = scalar_lea.vmem %s1320_s8, 2048  ;;  %s1961_s30 = int_to_ptr.vmem [resolvable:$true] %s989_s30 }
  0x9b   : > { %725 = vrot.lane.b32.xlu1 %v1710_v34, %s1419_s16  ;;  %s1315_s17 = scalar_lea.vmem %s1961_s30, 1024  ;;  %p1322_p10 = scmp.lt.s32.totalorder %s1961_s30, %s1320_s8 }
  0x9c   : > { %717 = vrot.lane.b32.xlu0 %v1729_v44, %s1419_s16  ;;  %p1316_p6 = scmp.ne.s32.totalorder %s1961_s30, %s1315_s17  ;;  %p1323_p11 = scmp.lt.s32.totalorder %s1321_s26, %s1315_s17 }
  0x9d   : > { %v554_v56 = vpop.permute.xlu1 %553 }
  0x9e   : > { %v509_v57 = vpop.permute.xlu0 %508  ;;  %p1317_p7 = pnand %p1316_p6, %p1504_p3  ;;  %p1324_p12 = por %p1323_p11, %p1322_p10 }
  0x9f   : > { %v742_v58 = vsel %vm737_vm7, %v1562_v12, %v509_v57  ;;  %727 = vrot.lane.b32.xlu1 %v1713_v35, %s1419_s16 }
  0xa0   : > { %v751_v59 = vsel %vm746_vm6, %v742_v58, %v554_v56  ;;  %719 = vrot.lane.b32.xlu0 %v1742_v50, %s1419_s16  ;;  %s1968_s16 = scalar_lea.sflag [#allocation3], %s332_s14  ;;  %p1318_p9 = pneg %p1317_p7 }
  0xa1   : > { %v760_v60 = vsel %vm755_vm8, %v751_v59, %v579_v21  ;;  %v556_v62 = vpop.permute.xlu1 %555 }
  0xa2   : > { %v752_v63 = vsel %vm746_vm6, %v743_v61, %v556_v62  ;;  %v501_v0 = vpop.permute.xlu0 %500  ;;  %p1325_p13 = pnand %p1324_p12, %p1318_p9 }
  0xa3   : > { %v738_v2 = vsel %vm737_vm7, %v1616_v33, %v501_v0 }
  0xa5   : > { %v581_v1 = vpop.permute.xlu1 %580 }
  0xa6   : > { %v1844_v12 = vsel %vm755_vm8, %v752_v63, %v581_v1  ;;  %v546_v3 = vpop.permute.xlu0 %545 }
  0xa7   : > { %v747_v4 = vsel %vm746_vm6, %v738_v2, %v546_v3 }
  0xa8   : > { %v756_v13 = vsel %vm755_vm8, %v747_v4, %v571_v22 }
  0xa9   : > { %v503_v5 = vpop.permute.xlu1 %502 }
  0xaa   : > { %v739_v6 = vsel %vm737_vm7, %v1620_v36, %v503_v5  ;;  %v548_v8 = vpop.permute.xlu0 %547 }
  0xab   : > { %v748_v14 = vsel %vm746_vm6, %v739_v6, %v548_v8 }
  0xac   : > { %v757_v17 = vsel %vm755_vm8, %v748_v14, %v573_v32 }
  0xad   : > { %v609_v16 = vpop.permute.xlu1 %608 }
  0xae   : > { %v601_v18 = vpop.permute.xlu0 %600  ;;  %v769_v52 = vsel %vm764_vm9, %v760_v60, %v609_v16 }
  0xaf   : > { %v765_v54 = vsel %vm764_vm9, %v756_v13, %v601_v18 }
  0xb1   : > { %v513_v19 = vpop.permute.xlu1 %512 }
  0xb2   : > { %v505_v20 = vpop.permute.xlu0 %504  ;;  %v744_v36 = vsel %vm737_vm7, %v1556_v10, %v513_v19 }
  0xb3   : > { %v740_v29 = vsel %vm737_vm7, %v1559_v11, %v505_v20 }
  0xb5   : > { %v611_v24 = vpop.permute.xlu1 %610 }
  0xb6   : > { %v603_v33 = vpop.permute.xlu0 %602  ;;  %v770_v63 = vsel %vm764_vm9, %v1844_v12, %v611_v24 }
  0xb7   : > { %v766_v2 = vsel %vm764_vm9, %v757_v17, %v603_v33 }
  0xb9   : > { %v638_v25 = vpop.permute.xlu1 %637 }
  0xba   : > { %v630_v26 = vpop.permute.xlu0 %629  ;;  %v778_v53 = vsel %vm773_vm10, %v769_v52, %v638_v25 }
  0xbb   : > { %v774_v21 = vsel %vm773_vm10, %v765_v54, %v630_v26 }
  0xbd   : > { %v1854_v7 = vpop.permute.xlu1 %514 }
  0xbe   : > { %v1856_v9 = vpop.permute.xlu0 %506 }
  0xc1   : > { %v558_v27 = vpop.permute.xlu1 %557 }
  0xc2   : > { %v1861_v28 = vsel %vm746_vm6, %v744_v36, %v558_v27  ;;  %v550_v30 = vpop.permute.xlu0 %549 }
  0xc3   : > { %v1866_v31 = vsel %vm746_vm6, %v740_v29, %v550_v30  ;;  %v745_v30 = vsel %vm737_vm7, %v1634_v42, %v1854_v7 }
  0xc5   : > { %v640_v34 = vpop.permute.xlu1 %639 }
  0xc6   : > { %v632_v35 = vpop.permute.xlu0 %631  ;;  %v779_v0 = vsel %vm773_vm10, %v770_v63, %v640_v34 }
  0xc7   : > { %v775_v4 = vsel %vm773_vm10, %v766_v2, %v632_v35 }
  0xc9   : > { %v663_v37 = vpop.permute.xlu1 %662 }
  0xca   : > { %v655_v38 = vpop.permute.xlu0 %654  ;;  %v787_v55 = vsel %vm782_vm11, %v778_v53, %v663_v37 }
  0xcb   : > { %v783_v32 = vsel %vm782_vm11, %v774_v21, %v655_v38 }
  0xcd   : > { %v1868_v39 = vpop.permute.xlu1 %559 }
  0xce   : > { %v1870_v40 = vpop.permute.xlu0 %551  ;;  %v754_v38 = vsel %vm746_vm6, %v745_v30, %v1868_v39 }
  0xd1   : > { %v583_v10 = vpop.permute.xlu1 %582 }
  0xd2   : > { %v575_v41 = vpop.permute.xlu0 %574  ;;  %v762_v36 = vsel %vm755_vm8, %v1861_v28, %v583_v10  ;;  %v741_v10 = vsel %vm737_vm7, %v1575_v15, %v1856_v9 }
  0xd3   : > { %v758_v34 = vsel %vm755_vm8, %v1866_v31, %v575_v41 }
  0xd5   : > { %v665_v43 = vpop.permute.xlu1 %664 }
  0xd6   : > { %v657_v44 = vpop.permute.xlu0 %656  ;;  %v788_v3 = vsel %vm782_vm11, %v779_v0, %v665_v43 }
  0xd7   : > { %v784_v6 = vsel %vm782_vm11, %v775_v4, %v657_v44  ;;  %v750_v44 = vsel %vm746_vm6, %v741_v10, %v1870_v40 }
  0xd9   : > { %v693_v45 = vpop.permute.xlu1 %692 }
  0xda   : > { %v685_v46 = vpop.permute.xlu0 %684  ;;  %v796_v22 = vsel %vm791_vm12, %v787_v55, %v693_v45 }
  0xdb   : > { %v792_v57 = vsel %vm791_vm12, %v783_v32, %v685_v46 }
  0xdd   : > { %v1872_v47 = vpop.permute.xlu1 %584 }
  0xde   : > { %v1874_v11 = vpop.permute.xlu0 %576  ;;  %v763_v42 = vsel %vm755_vm8, %v754_v38, %v1872_v47 }
  0xdf   : > { %v759_v15 = vsel %vm755_vm8, %v750_v44, %v1874_v11 }
  0xe1   : > { %v613_v50 = vpop.permute.xlu1 %612 }
  0xe2   : > { %v605_v51 = vpop.permute.xlu0 %604  ;;  %v771_v29 = vsel %vm764_vm9, %v762_v36, %v613_v50 }
  0xe3   : > { %v767_v43 = vsel %vm764_vm9, %v758_v34, %v605_v51 }
  0xe5   : > { %v695_v48 = vpop.permute.xlu1 %694 }
  0xe6   : > { %v687_v49 = vpop.permute.xlu0 %686  ;;  %v797_v5 = vsel %vm791_vm12, %v788_v3, %v695_v48 }
  0xe7   : > { %v793_v14 = vsel %vm791_vm12, %v784_v6, %v687_v49 }
  0xe9   : > { %v722_v23 = vpop.permute.xlu1 %721 }
  0xea   : > { %v805_v56 = vsel %vm800_vm13, %v796_v22, %v722_v23  ;;  %v714_v58 = vpop.permute.xlu0 %713  ;;  %v1149_v23 = vld [vmem:[%s2024_s4] ss:$0 sm:$0xff] }
  0xeb   : > { %1201 = vmatprep.mubr.msk.f32.mxu1 %vm813_vm14, %v805_v56  ;;  %v801_v59 = vsel %vm800_vm13, %v792_v57, %v714_v58 }
  0xec   : > { %1195 = vmatprep.mubr.msk.f32.mxu0 %vm813_vm14, %v801_v59 }
  0xed   : > { %v615_v60 = vpop.permute.xlu1 %614 }
  0xee   : > { %v607_v61 = vpop.permute.xlu0 %606  ;;  %v772_v39 = vsel %vm764_vm9, %v763_v42, %v615_v60 }
  0xef   : > { %v768_v51 = vsel %vm764_vm9, %v759_v15, %v607_v61 }
  0xf1   : > { %v642_v62 = vpop.permute.xlu1 %641 }
  0xf2   : > { %v634_v1 = vpop.permute.xlu0 %633  ;;  %v780_v35 = vsel %vm773_vm10, %v771_v29, %v642_v62 }
  0xf3   : > { %v776_v7 = vsel %vm773_vm10, %v767_v43, %v634_v1 }
  0xf5   : > { %v724_v13 = vpop.permute.xlu1 %723 }
  0xf6   : > { %v806_v8 = vsel %vm800_vm13, %v797_v5, %v724_v13  ;;  %v716_v16 = vpop.permute.xlu0 %715 }
  0xf7   : > { %1202 = vmatmul.mubr.msk.f32.vlgmr.msra.gmra.mrb[0].mxu1 %vm813_vm14, %v806_v8  ;;  %v802_v12 = vsel %vm800_vm13, %v793_v14, %v716_v16 }
  0xf8   : > { %1196 = vmatmul.mubr.msk.f32.vlgmr.msra.gmra.mrb[0].mxu0 %vm813_vm14, %v802_v12 }
  0xf9   : > { %v644_v17 = vpop.permute.xlu1 %643 }
  0xfa   : > { %v636_v18 = vpop.permute.xlu0 %635  ;;  %v781_v9 = vsel %vm773_vm10, %v772_v39, %v644_v17 }
  0xfb   : > { %v777_v52 = vsel %vm773_vm10, %v768_v51, %v636_v18 }
  0xfd   : > { %v667_v19 = vpop.permute.xlu1 %666 }
  0xfe   : > { %v659_v20 = vpop.permute.xlu0 %658  ;;  %v789_v28 = vsel %vm782_vm11, %v780_v35, %v667_v19 }
  0xff   : > { %v785_v45 = vsel %vm782_vm11, %v776_v7, %v659_v20 }
 0x101   : > { %v669_v24 = vpop.permute.xlu1 %668 }
 0x102   : > { %v661_v33 = vpop.permute.xlu0 %660  ;;  %v790_v40 = vsel %vm782_vm11, %v781_v9, %v669_v24 }
 0x103   : > { %v786_v49 = vsel %vm782_vm11, %v777_v52, %v661_v33 }
 0x105   : > { %v697_v25 = vpop.permute.xlu1 %696 }
 0x106   : > { %v689_v26 = vpop.permute.xlu0 %688  ;;  %v798_v31 = vsel %vm791_vm12, %v789_v28, %v697_v25 }
 0x107   : > { %v794_v47 = vsel %vm791_vm12, %v785_v45, %v689_v26 }
 0x109   : > { %v699_v27 = vpop.permute.xlu1 %698 }
 0x10a   : > { %v691_v37 = vpop.permute.xlu0 %690  ;;  %v799_v53 = vsel %vm791_vm12, %v790_v40, %v699_v27 }
 0x10b   : > { %v795_v55 = vsel %vm791_vm12, %v786_v49, %v691_v37 }
 0x10d   : > { %v726_v41 = vpop.permute.xlu1 %725 }
 0x10e   : > { %v807_v46 = vsel %vm800_vm13, %v798_v31, %v726_v41  ;;  %v718_v50 = vpop.permute.xlu0 %717 }
 0x10f   : > { %1204 = vmatprep.mubr.msk.f32.mxu1 %vm813_vm14, %v807_v46  ;;  %v803_v48 = vsel %vm800_vm13, %v794_v47, %v718_v50 }
 0x110   : > { %1198 = vmatprep.mubr.msk.f32.mxu0 %vm813_vm14, %v803_v48 }
 0x111   : > { %v728_v11 = vpop.permute.xlu1 %727 }
 0x112   : > { %v808_v54 = vsel %vm800_vm13, %v799_v53, %v728_v11  ;;  %v720_v21 = vpop.permute.xlu0 %719 }
 0x113   : > { %1205 = vmatmul.mubr.msk.f32.gmra.mrb[2].mxu1 %vm813_vm14, %v808_v54  ;;  %v804_v22 = vsel %vm800_vm13, %v795_v55, %v720_v21 }
 0x114   : > { %1199 = vmatmul.mubr.msk.f32.gmra.mrb[2].mxu0 %vm813_vm14, %v804_v22 }
 0x1ca   : > { %v1203_v32 = vpop.f32.mrb[0].mxu1 }
 0x1cb   : > { %v952_v56 = vadd.f32 %v1203_v32, %v1149_v23  ;;  %v928_v57 = vpop.f32.mrb[1].mxu1  ;;  %v1197_v58 = vpop.f32.mrb[0].mxu0 }
 0x1cc   : > { %v951_v59 = vadd.f32 %v1149_v23, %v928_v57  ;;  %v948_v60 = vadd.f32 %v1197_v58, %v1149_v23  ;;  %v908_v62 = vpop.f32.mrb[1].mxu0 }
 0x1cd   : > { %v960_v61 = vmax.f32 %v952_v56, 0.0  ;;  %v947_v63 = vadd.f32 %v1149_v23, %v908_v62 }
 0x1ce   : > { %v959_v0 = vmax.f32 %v951_v59, 0.0  ;;  %v956_v1 = vmax.f32 %v948_v60, 0.0 }
 0x1cf   : > { %969 = vst.msk [vmem:[%s334_s9 + $0x28] sm:$0xff] %vm963_vm15, %v960_v61  ;;  %v955_v2 = vmax.f32 %v947_v63, 0.0 }
 0x1d0   : > { %968 = vst.msk [vmem:[%s334_s9 + $0x20] sm:$0xff] %vm963_vm15, %v959_v0  ;;  %965 = vst.msk [vmem:[%s334_s9 + $0x8] sm:$0xff] %vm963_vm15, %v956_v1 }
 0x1d1   : > { %964 = vst.msk [vmem:[%s334_s9] sm:$0xff] %vm963_vm15, %v955_v2 }
 0x1e6   : > { %v1206_v3 = vpop.f32.mrb[2].mxu1 }
 0x1e7   : > { %v954_v4 = vadd.f32 %v1206_v3, %v1149_v23  ;;  %v938_v5 = vpop.f32.mrb[3].mxu1  ;;  %v1200_v13 = vpop.f32.mrb[2].mxu0 }
 0x1e8   : > { %v953_v6 = vadd.f32 %v1149_v23, %v938_v5  ;;  %v950_v8 = vadd.f32 %v1200_v13, %v1149_v23  ;;  %v918_v16 = vpop.f32.mrb[3].mxu0 }
 0x1e9   : > { %v962_v14 = vmax.f32 %v954_v4, 0.0  ;;  %v949_v12 = vadd.f32 %v1149_v23, %v918_v16 }
 0x1ea   : > { %v961_v17 = vmax.f32 %v953_v6, 0.0  ;;  %v958_v18 = vmax.f32 %v950_v8, 0.0 }
 0x1eb   : > { %971 = vst.msk [vmem:[%s334_s9 + $0x38] sm:$0xff] %vm963_vm15, %v962_v14  ;;  %v957_v19 = vmax.f32 %v949_v12, 0.0 }
 0x1ec   : > { %970 = vst.msk [vmem:[%s334_s9 + $0x30] sm:$0xff] %vm963_vm15, %v961_v17  ;;  %967 = vst.msk [vmem:[%s334_s9 + $0x18] sm:$0xff] %vm963_vm15, %v958_v18 }
 0x1ed   : > { %966 = vst.msk [vmem:[%s334_s9 + $0x10] sm:$0xff] %vm963_vm15, %v957_v19 }
 0x1ee   : > { %1328 = shalt.err (!%p1325_p13)
}
 0x1ef   : > { %s1329_s14 = scalar_lea.hbm %s1959_s10, 1024  ;;  %s1333_s27 = scalar_lea.hbm %s2025_s5, 8192 }
 0x1f0   : > { %p1330_p0 = scmp.ne.s32.totalorder %s1959_s10, %s1329_s14  ;;  %p1334_p4 = scmp.lt.u32.totalorder %s1959_s10, %s2025_s5 }
 0x1f1   : > { %p1335_p5 = scmp.lt.u32.totalorder %s1333_s27, %s1329_s14  ;;  %p1337_p7 = scmp.lt.u32.totalorder %s1329_s14, %s1959_s10 }
 0x1f2   : > { %p1331_p1 = pnand %p1330_p0, %p1504_p3 }
 0x1f3   : > { %p1336_p6 = por %p1335_p5, %p1334_p4 }
 0x1f4   : > { %p1332_p2 = pneg %p1331_p1 }
 0x1f5   : > { %p1338_p9 = por %p1337_p7, %p1336_p6 }
 0x1f7   : > { %p1339_p10 = pnand %p1338_p9, %p1332_p2 }
 0x1f9   : > { %1342 = shalt.err (!%p1339_p10)
}
 0x1fa   : > { %s1421_s22 = smov 128   ;;  %s1422_s17 = smov 8  }
 0x1fb   : > { %1221 = dma.vmem_to_hbm [thread:$0]  (%p1504_p3), %s1961_s30, 1024, %s1959_s10, %s1968_s16, %s1421_s22, %s1421_s22, %s1422_s17  }
 0x1fc PF: > { %p1227_p11 = scmp.ge.s32.totalorder %s1409_s25, 2  ;;  %s1004_s12 = sand.u32 1, %s1381_s18  }
 0x1fd   : > { %s1005_s8 = scalar_lea.sflag [#allocation3], %s1004_s12 }
 0x1fe   : > { %p1224_p12 = pnand %p1227_p11, %p1513_p8 }
 0x200   : > { %1376 = dma.done.wait (!%p1224_p12), %s1005_s8, 1024  }
 0x201   : > { %1378 = vsyncadd (!%p1224_p12), %s1005_s8, 4294966272  ;;  %s18_s25 = sadd.s32 1, %s1409_s25   ;;  %s2029_s18 = smov %s1385_s19 }
 0x202   : > { %p15_p13 = scmp.ge.s32.totalorder %s18_s25, 10   ;;  %s2030_s19 = smov %s1389_s20 }
 0x203   : > { %s2031_s20 = smov %s1522_s11  ;;  %s2032_s21 = smov %s1401_s23 }
 0x204   : > { %s2033_s22 = smov %s1405_s24  ;;  %s2034_s23 = smov %s2037_s28 }
 0x205   : > { %s2035_s24 = smov %s2041_s29  ;;  %17 = sbr.rel (!%p15_p13) target bundleno = 5 (0x5), region = 81 }
 0x20c   :  { %1010 = vsyncpa [#allocation3], 1 }
 0x20d   :  { %1012 = vsyncpa [#allocation3 + $0x1], 1 }

</bundles_post_ra>
